<compile_context>
chip_gen: v6e
topology: v6e:2x2x1
jax: 0.10.0
libtpu: 0.0.40
codegen_flags: <defaults>
</compile_context>

<pallas_src>
import jax
import jax.numpy as jnp
from jax.experimental import pallas as pl
from jax.experimental.pallas import tpu as pltpu

_LANE = 128
_MAX_COLS = 4096                       # widest lane-dense last dim we try
_SINGLE_BLOCK_BYTES = 1 << 20          # below this: one block, no grid loop
_RAGGED_FULL_BLOCK_BYTES = 2 << 20     # padded-footprint cap for ragged full-block path


def _h_sigmoid_kernel(x_ref, o_ref):
    # relu6(x + 3) / 6 == clamp(x + 3, 0, 6) * (1/6); compute in f32 and cast
    # on store so bf16 inputs keep f32-accurate intermediates (also keeps v5e,
    # which has no bf16 VALU, on the fast path).  Kernel is HBM-bound, so the
    # extra VALU width is hidden.
    x = x_ref[...].astype(jnp.float32)
    o_ref[...] = (jnp.clip(x + 3.0, 0.0, 6.0) * (1.0 / 6.0)).astype(o_ref.dtype)


def _chip_config():
    """(block_bytes, vmem_limit_bytes) picked per TPU generation."""
    try:
        vmem_cap = int(pltpu.get_tpu_info().vmem_capacity_bytes)
    except Exception:
        vmem_cap = None
    if vmem_cap is not None and vmem_cap <= (64 << 20):
        # v7x-class: faster HBM makes per-step overhead proportionally larger,
        # so use bigger blocks; 2 x (in+out) x 8 MiB = 32 MiB <= 48 MiB limit.
        return 8 << 20, 48 << 20
    if vmem_cap is not None:
        # v5e / v6e: 128 MiB physical VMEM, plenty of headroom for 6 MiB blocks.
        return 6 << 20, 40 << 20
    # Unknown backend (e.g. interpret mode): conservative known-good values.
    return 4 << 20, 32 << 20


def _pick_cols(total, sub):
    """Pick a lane-dense last dim (multiple of 128, <= _MAX_COLS) dividing `total`.

    Prefers the widest cols whose row count (total // cols) is a multiple of
    the dtype's sublane tile `sub`, then the widest with rows >= sub, then the
    widest divisor (old behavior)."""
    upper = min(_MAX_COLS, (total // _LANE) * _LANE)
    best_any = None
    best_rows_ge_sub = None
    for c in range(upper, 0, -_LANE):
        if total % c:
            continue
        r = total // c
        if best_any is None:
            best_any = c
        if r >= sub and best_rows_ge_sub is None:
            best_rows_ge_sub = c
        if r % sub == 0:
            return c
    return best_rows_ge_sub if best_rows_ge_sub is not None else best_any


def _h_sigmoid_2d(x2d, block_bytes, vmem_limit):
    """Streaming elementwise pass over a lane-aligned 2D slab."""
    rows, cols = x2d.shape
    itemsize = jnp.dtype(x2d.dtype).itemsize
    sub = max(8, 32 // max(itemsize, 1))      # 8 f32 / 16 bf16 / 32 int8
    slab_bytes = rows * cols * itemsize

    if slab_bytes <= _SINGLE_BLOCK_BYTES or rows <= sub:
        # Tiny slab: dispatch-dominated; one block, no grid-loop overhead.
        block_rows = rows
    else:
        target_rows = max(sub, (block_bytes // (cols * itemsize)) // sub * sub)
        # Keep at least 2 grid steps so both v7x TensorCores stream and the
        # DMA pipeline overlaps compute (harmless on single-TC chips).
        cap_rows = max(sub, (pl.cdiv(rows, 2) // sub) * sub)
        block_rows = min(target_rows, cap_rows)

    grid = (pl.cdiv(rows, block_rows),)

    return pl.pallas_call(
        _h_sigmoid_kernel,
        out_shape=jax.ShapeDtypeStruct(x2d.shape, x2d.dtype),
        grid=grid,
        in_specs=[pl.BlockSpec((block_rows, cols), lambda i: (i, 0))],
        out_specs=pl.BlockSpec((block_rows, cols), lambda i: (i, 0)),
        compiler_params=pltpu.CompilerParams(
            dimension_semantics=("parallel",),
            vmem_limit_bytes=vmem_limit,
        ),
    )(x2d)


def h_sigmoid(x):
    """Elementwise relu6(x + 3) / 6.  Floating-point input, any shape (e.g. NCHW)."""
    orig_shape = x.shape
    total = x.size
    if total == 0:
        return x

    itemsize = jnp.dtype(x.dtype).itemsize
    sub = max(8, 32 // max(itemsize, 1))
    block_bytes, vmem_limit = _chip_config()

    if total % _LANE == 0:
        # Common case (typical NCHW activations): exact lane-dense reshape,
        # no padding, no trailing slice -> 1x HBM traffic.
        cols = _pick_cols(total, sub)
        x2d = x.reshape(total // cols, cols)
        return _h_sigmoid_2d(x2d, block_bytes, vmem_limit).reshape(orig_shape)

    # Ragged element count (not a multiple of 128).
    view = x.reshape(-1, x.shape[-1]) if x.ndim >= 2 else x.reshape(1, -1)
    r, c = view.shape
    padded_bytes = (pl.cdiv(r, sub) * sub) * (pl.cdiv(c, _LANE) * _LANE) * itemsize
    if padded_bytes <= _RAGGED_FULL_BLOCK_BYTES:
        # Small ragged tensor: run it as a single full-array block (block dims
        # equal the array dims, so the (8,128) rule is satisfied).  No wrapper
        # pad/slice -> 1x HBM traffic instead of ~3x.
        out = pl.pallas_call(
            _h_sigmoid_kernel,
            out_shape=jax.ShapeDtypeStruct(view.shape, view.dtype),
        )(view)
        return out.reshape(orig_shape)

    # Rare large-ragged fallback: pad the flat buffer to a lane multiple and
    # stream it.  Pays one extra HBM pass each way (pad + final slice); kept
    # simple because real LRAM activations never hit this path.
    padded_total = pl.cdiv(total, _LANE) * _LANE
    flat = jnp.pad(x.reshape(-1), (0, padded_total - total))
    cols = _pick_cols(padded_total, sub)
    out2d = _h_sigmoid_2d(flat.reshape(padded_total // cols, cols), block_bytes, vmem_limit)
    return out2d.reshape(-1)[:total].reshape(orig_shape)


if __name__ == "__main__":
    key = jax.random.PRNGKey(0)

    # Small NCHW input matching the PyTorch module's typical use.
    x = jax.random.normal(key, (2, 4, 16, 16), dtype=jnp.float32) * 4.0
    y = jax.block_until_ready(h_sigmoid(x))
    y_ref = jnp.clip(x + 3.0, 0.0, 6.0) / 6.0
    assert y.shape == x.shape and y.dtype == x.dtype
    assert jnp.allclose(y, y_ref, atol=1e-6), "f32 mismatch vs reference"

    # Moderately sized aligned input exercises the multi-step "parallel" grid.
    xl = jax.random.normal(jax.random.PRNGKey(2), (8, 64, 32, 32), dtype=jnp.float32) * 4.0
    yl = jax.block_until_ready(h_sigmoid(xl))
    yl_ref = jnp.clip(xl + 3.0, 0.0, 6.0) / 6.0
    assert jnp.allclose(yl, yl_ref, atol=1e-6), "large f32 mismatch vs reference"

    # Ragged element count (not a multiple of 128) exercises the full-block ragged path.
    xr = jax.random.normal(jax.random.PRNGKey(1), (3, 5, 7, 11), dtype=jnp.float32) * 4.0
    yr = jax.block_until_ready(h_sigmoid(xr))
    yr_ref = jnp.clip(xr + 3.0, 0.0, 6.0) / 6.0
    assert jnp.allclose(yr, yr_ref, atol=1e-6), "ragged mismatch vs reference"

    # bf16 path (compute in f32 inside the kernel, cast on store).
    xb = x.astype(jnp.bfloat16)
    yb = jax.block_until_ready(h_sigmoid(xb))
    yb_ref = (jnp.clip(xb.astype(jnp.float32) + 3.0, 0.0, 6.0) / 6.0).astype(jnp.bfloat16)
    assert yb.dtype == jnp.bfloat16
    assert jnp.allclose(yb.astype(jnp.float32), yb_ref.astype(jnp.float32), atol=1e-2)

    print("KERNEL_OK")
</pallas_src>

<mosaic_0001>
module attributes {stable_mosaic.version = 11 : i64} {
  func.func @_h_sigmoid_kernel(%arg0: i32, %arg1: memref<8x256xf32, #tpu.memory_space<vmem>>, %arg2: memref<8x256xf32, #tpu.memory_space<vmem>>) attributes {dimension_semantics = [#tpu.dimension_semantics<parallel>], iteration_bounds = array<i64: 1>, scalar_prefetch = 0 : i64, scratch_operands = 0 : i64, tpu.core_type = #tpu.core_type<tc>, window_params = [{transform_indices = @transform_0, window_bounds = array<i64: 8, 256>}, {transform_indices = @transform_1, window_bounds = array<i64: 8, 256>}]} {
    %c0 = arith.constant 0 : index
    %c0_0 = arith.constant 0 : index
    %0 = vector.load %arg1[%c0, %c0_0] : memref<8x256xf32, #tpu.memory_space<vmem>>, vector<8x256xf32>
    %cst = arith.constant 3.000000e+00 : f32
    %1 = vector.broadcast %cst : f32 to vector<8x256xf32>
    %2 = arith.addf %0, %1 : vector<8x256xf32>
    %cst_1 = arith.constant 0.000000e+00 : f32
    %cst_2 = arith.constant 6.000000e+00 : f32
    %3 = vector.broadcast %cst_1 : f32 to vector<8x256xf32>
    %4 = arith.maximumf %3, %2 : vector<8x256xf32>
    %5 = vector.broadcast %cst_2 : f32 to vector<8x256xf32>
    %6 = arith.minimumf %5, %4 : vector<8x256xf32>
    %cst_3 = arith.constant 0.166666672 : f32
    %7 = vector.broadcast %cst_3 : f32 to vector<8x256xf32>
    %8 = arith.mulf %6, %7 : vector<8x256xf32>
    %c0_4 = arith.constant 0 : index
    %c0_5 = arith.constant 0 : index
    %9 = vector.load %arg2[%c0_4, %c0_5] : memref<8x256xf32, #tpu.memory_space<vmem>>, vector<8x256xf32>
    tpu.vector_store %arg2[%c0_4, %c0_5], %8 {strides = array<i32>} : memref<8x256xf32, #tpu.memory_space<vmem>>, vector<8x256xf32>,
    return
  }
  func.func @transform_0(%arg0: i32) -> (i32, i32) {
    %c0_i32 = arith.constant 0 : i32
    %c0_i32_0 = arith.constant 0 : i32
    return %arg0, %c0_i32 : i32, i32
  }
  func.func @transform_1(%arg0: i32) -> (i32, i32) {
    %c0_i32 = arith.constant 0 : i32
    %c0_i32_0 = arith.constant 0 : i32
    return %arg0, %c0_i32 : i32, i32
  }
}

</mosaic_0001>

<bundles_post_ra>
// kernel: tpu_custom_call.1
= control target key start
LH: loop header
LB: loop body
LE: loop exit
PB: predicated region body
PF: predicated region fallthrough
CT: control target
= control target key end

     0   :  { %6 = vsyncpa [#allocation3], 0  ;;  %s112_s0 = inlined_call_operand.hbm [shape: f32[8,256], index: 0, kind: input, shape index: {}]   ;;  %s113_s1 = inlined_call_operand.hbm [shape: f32[8,256], index: 1, kind: output, shape index: {}]  }
   0x1   :  { %7 = vsyncpa [#allocation4], 0  ;;  %s94_s6 = smov [#allocation2]  }
   0x2   :  { %s14_s7 = sshll.u32 %s94_s6, 4  ;;  %s15_s7 = int_to_ptr.vmem [resolvable:$true] %s14_s7 }
   0x3   :  { %s58_s8 = scalar_lea.vmem %s15_s7, 256  ;;  %p63_p1 = scmp.lt.s32.totalorder %s15_s7, %s15_s7 }
   0x4   :  { %p59_p0 = scmp.ne.s32.totalorder %s15_s7, %s58_s8  ;;  %p64_p2 = scmp.lt.s32.totalorder %s58_s8, %s58_s8 }
   0x6   :  { %p65_p3 = por %p64_p2, %p63_p1 }
   0x8   :  { %p66_p4 = pnand %p65_p3, %p59_p0 }
   0xa   :  { %69 = shalt.err (!%p66_p4)
}
   0xb   :  { %17 = dma.hbm_to_vmem [thread:$0]  %s112_s0, 256, %s15_s7, [#allocation3]  }
   0xc   :  { %90 = dma.done.wait [#allocation3], 256  }
   0xd   :  { %91 = vsyncadd [#allocation3], 4294967040  ;;  %v21_v0 = vld [vmem:[#allocation2] sm:$0xff]  ;;  %v22_v1 = vld [vmem:[#allocation2 + $0x8] sm:$0xff]  ;;  %s95_s11 = smov [#allocation5]  }
   0xe   :  { %v23_v2 = vadd.f32 3.0, %v21_v0  ;;  %v24_v3 = vadd.f32 3.0, %v22_v1  ;;  %s39_s12 = sshll.u32 %s95_s11, 4  ;;  %s40_s12 = int_to_ptr.vmem [resolvable:$true] %s39_s12 }
   0xf   :  { %s70_s13 = scalar_lea.vmem %s40_s12, 256  ;;  %p75_p6 = scmp.lt.s32.totalorder %s40_s12, %s40_s12 }
  0x10   :  { %v25_v4 = vmax.f32 %v23_v2, 0.0  ;;  %v26_v5 = vmax.f32 %v24_v3, 0.0  ;;  %p71_p5 = scmp.ne.s32.totalorder %s40_s12, %s70_s13  ;;  %p76_p7 = scmp.lt.s32.totalorder %s70_s13, %s70_s13 }
  0x12   :  { %v27_v6 = vmin.f32 %v25_v4, 6.0  ;;  %v28_v7 = vmin.f32 %v26_v5, 6.0  ;;  %p77_p8 = por %p76_p7, %p75_p6 }
  0x14   :  { %v29_v8 = vmul.f32 0.16666667, %v27_v6  ;;  %v30_v9 = vmul.f32 0.16666667, %v28_v7  ;;  %p78_p9 = pnand %p77_p8, %p71_p5 }
  0x16   :  { %31 = vst [vmem:[#allocation5] sm:$0xff] %v29_v8  ;;  %32 = vst [vmem:[#allocation5 + $0x8] sm:$0xff] %v30_v9 }
  0x17   :  { %81 = shalt.err (!%p78_p9)
}
  0x18   :  { %42 = dma.vmem_to_hbm [thread:$0]  %s40_s12, 256, %s113_s1, [#allocation4]  }
  0x19   :  { %92 = dma.done.wait [#allocation4], 256  }
  0x1a   :  { %93 = vsyncadd [#allocation4], 4294967040 }
  0x1b   :  { %46 = vsyncpa [#allocation3], 1 }
  0x1c   :  { %47 = vsyncpa [#allocation4], 1 }

</bundles_post_ra>
